<compile_context>
chip_gen: v6e
topology: v6e:2x2x1
jax: 0.10.0
libtpu: 0.0.40
codegen_flags: <defaults>
</compile_context>

<pallas_src>
import functools

import jax
import jax.numpy as jnp
from jax.experimental import pallas as pl
from jax.experimental.pallas import tpu as pltpu

N_LAYERS = 7
N_HIDDEN = N_LAYERS - 1  # six square Linear+ReLU layers


# --------------------------------------------------------------------------- #
# Kernel
# --------------------------------------------------------------------------- #
def _mlp_kernel(x_ref, w_sq_ref, b_sq_ref, w_last_ref, b_last_ref, o_ref):
    # x_ref: [tile_batch, in_features] (batch-major, as supplied by the user).
    # Transpose in-kernel (XLU slot, effectively free here) so the batch rides
    # the 128-lane axis and every layer's output is lane-dense.
    h = x_ref[...].astype(jnp.float32).T                 # [in, tile_batch]

    for li in range(N_HIDDEN):
        w = w_sq_ref[li]                                 # [in, in]  (bf16)
        h = jnp.dot(w, h.astype(w.dtype),
                    preferred_element_type=jnp.float32)  # f32 accumulate
        h = jnp.maximum(h + b_sq_ref[li], 0.0)           # f32 epilogue

    w = w_last_ref[...]                                  # [out, in] (bf16)
    h = jnp.dot(w, h.astype(w.dtype),
                preferred_element_type=jnp.float32)
    h = jnp.maximum(h + b_last_ref[...], 0.0)            # [out, tile_batch]

    o_ref[...] = h.T.astype(o_ref.dtype)                 # [tile_batch, out]


# --------------------------------------------------------------------------- #
# Parameter packing (done once, outside the per-call path)
# --------------------------------------------------------------------------- #
def pack_params(weights, biases, *, param_dtype=jnp.bfloat16):
    """weights[i]: [fan_out, fan_in] (PyTorch nn.Linear layout), biases[i]: [fan_out]."""
    in_features = weights[0].shape[1]
    out_features = weights[-1].shape[0]
    w_sq = jnp.stack(weights[:-1]).astype(param_dtype)                 # [6, in, in]
    b_sq = jnp.stack(
        [b.reshape(in_features, 1) for b in biases[:-1]]
    ).astype(jnp.float32)                                              # [6, in, 1]
    w_last = weights[-1].astype(param_dtype)                           # [out, in]
    b_last = biases[-1].reshape(out_features, 1).astype(jnp.float32)   # [out, 1]
    return w_sq, b_sq, w_last, b_last


# --------------------------------------------------------------------------- #
# Forward
# --------------------------------------------------------------------------- #
def metadata_module_forward(x, packed_params, *, max_tile=1024):
    """x: [B, in_features] -> [B, out_features]."""
    w_sq, b_sq, w_last, b_last = packed_params
    B, in_features = x.shape
    out_features = w_last.shape[0]

    param_bytes = sum(int(a.size) * a.dtype.itemsize
                      for a in (w_sq, b_sq, w_last, b_last))
    flops = 2 * B * (N_HIDDEN * in_features * in_features
                     + in_features * out_features)
    bytes_accessed = (x.size * x.dtype.itemsize
                      + B * out_features * x.dtype.itemsize
                      + param_bytes)
    cost = pl.CostEstimate(flops=flops, transcendentals=0,
                           bytes_accessed=bytes_accessed)

    if B <= max_tile:
        # Single invocation: no grid, no padding, no per-step pipeline cost.
        return pl.pallas_call(
            _mlp_kernel,
            out_shape=jax.ShapeDtypeStruct((B, out_features), x.dtype),
            cost_estimate=cost,
        )(x, w_sq, b_sq, w_last, b_last)

    # Large batch: lane-dense, 128-multiple batch tiles; 1-D "parallel" grid
    # shards across v7x's two TensorCores.
    tile_batch = max_tile - (max_tile % 128) if max_tile >= 128 else 128
    num_tiles = pl.cdiv(B, tile_batch)
    B_pad = num_tiles * tile_batch
    x_p = jnp.pad(x, ((0, B_pad - B), (0, 0))) if B_pad != B else x

    in_specs = [
        pl.BlockSpec((tile_batch, in_features), lambda i: (i, 0)),   # activations
        pl.BlockSpec(w_sq.shape, lambda i: (0, 0, 0)),               # stacked square Ws
        pl.BlockSpec(b_sq.shape, lambda i: (0, 0, 0)),               # stacked square bs
        pl.BlockSpec(w_last.shape, lambda i: (0, 0)),                # last W
        pl.BlockSpec(b_last.shape, lambda i: (0, 0)),                # last b
    ]
    out_spec = pl.BlockSpec((tile_batch, out_features), lambda i: (i, 0))

    out = pl.pallas_call(
        _mlp_kernel,
        out_shape=jax.ShapeDtypeStruct((B_pad, out_features), x.dtype),
        grid_spec=pltpu.PrefetchScalarGridSpec(
            num_scalar_prefetch=0,
            grid=(num_tiles,),
            in_specs=in_specs,
            out_specs=out_spec,
        ),
        compiler_params=pltpu.CompilerParams(
            dimension_semantics=("parallel",),
        ),
        cost_estimate=cost,
    )(x_p, w_sq, b_sq, w_last, b_last)

    return out[:B] if B_pad != B else out


# --------------------------------------------------------------------------- #
# Reference + init (PyTorch nn.Linear semantics)
# --------------------------------------------------------------------------- #
def init_params(key, in_features, out_features):
    """PyTorch nn.Linear default init: U(-1/sqrt(fan_in), 1/sqrt(fan_in))."""
    dims = [(in_features, in_features)] * N_HIDDEN + [(in_features, out_features)]
    weights, biases = [], []
    for fan_in, fan_out in dims:
        key, kw, kb = jax.random.split(key, 3)
        bound = 1.0 / jnp.sqrt(jnp.float32(fan_in))
        weights.append(jax.random.uniform(kw, (fan_out, fan_in), jnp.float32,
                                          -bound, bound))
        biases.append(jax.random.uniform(kb, (fan_out,), jnp.float32,
                                         -bound, bound))
    return weights, biases


def reference_forward(x, weights, biases):
    h = x
    for w, b in zip(weights, biases):
        h = jnp.maximum(h @ w.T + b, 0.0)
    return h


# --------------------------------------------------------------------------- #
# Demo / self-test
# --------------------------------------------------------------------------- #
if __name__ == "__main__":
    in_features = 32
    out_features = 16
    batch = 256

    key = jax.random.PRNGKey(0)
    key, kx = jax.random.split(key)
    x = jax.random.normal(kx, (batch, in_features), jnp.float32)

    weights, biases = init_params(key, in_features, out_features)
    packed = pack_params(weights, biases)          # done once, outside forward
    ref = reference_forward(x, weights, biases)

    fwd = jax.jit(metadata_module_forward, static_argnames=("max_tile",))

    # Path 1: single invocation, gridless (the common small-batch case).
    out = jax.block_until_ready(fwd(x, packed, max_tile=1024))
    assert out.shape == (batch, out_features)
    # bf16 weights -> loosened tolerance vs. the f32 reference.
    assert jnp.allclose(out, ref, atol=5e-2, rtol=5e-2)

    # Path 2: tiled grid (exercises the multi-tile / megacore code path).
    out_tiled = jax.block_until_ready(fwd(x, packed, max_tile=128))
    assert out_tiled.shape == (batch, out_features)
    assert jnp.allclose(out_tiled, ref, atol=5e-2, rtol=5e-2)

    print("KERNEL_OK")
</pallas_src>

<mosaic_0001>
module attributes {stable_mosaic.version = 11 : i64} {
  func.func @_mlp_kernel(%arg0: memref<256x32xf32, #tpu.memory_space<vmem>>, %arg1: memref<6x32x32xbf16, #tpu.memory_space<vmem>>, %arg2: memref<6x32x1xf32, #tpu.memory_space<vmem>>, %arg3: memref<16x32xbf16, #tpu.memory_space<vmem>>, %arg4: memref<16x1xf32, #tpu.memory_space<vmem>>, %arg5: memref<256x16xf32, #tpu.memory_space<vmem>>) attributes {dimension_semantics = [], scalar_prefetch = 0 : i64, scratch_operands = 0 : i64, tpu.core_type = #tpu.core_type<tc>} {
    %c0 = arith.constant 0 : index
    %c0_0 = arith.constant 0 : index
    %0 = vector.load %arg0[%c0, %c0_0] : memref<256x32xf32, #tpu.memory_space<vmem>>, vector<256x32xf32>
    %1 = tpu.transpose %0, [1, 0] : vector<256x32xf32> -> vector<32x256xf32>
    %c0_1 = arith.constant 0 : index
    %c0_2 = arith.constant 0 : index
    %c0_3 = arith.constant 0 : index
    %2 = vector.load %arg1[%c0_1, %c0_2, %c0_3] : memref<6x32x32xbf16, #tpu.memory_space<vmem>>, vector<1x32x32xbf16>
    %3 = vector.shape_cast %2 : vector<1x32x32xbf16> to vector<32x32xbf16>
    %4 = arith.truncf %1 : vector<32x256xf32> to vector<32x256xbf16>
    %cst = arith.constant dense<0.000000e+00> : vector<32x256xf32>
    %5 = tpu.matmul %3, %4, %cst {dimension_numbers = #tpu.dot_dimension_numbers<[1], [0], [0], [1], [0, 0, 1, 1], [], []>} : vector<32x32xbf16>, vector<32x256xbf16>, vector<32x256xf32> -> vector<32x256xf32>
    %c0_4 = arith.constant 0 : index
    %c0_5 = arith.constant 0 : index
    %c0_6 = arith.constant 0 : index
    %6 = vector.load %arg2[%c0_4, %c0_5, %c0_6] : memref<6x32x1xf32, #tpu.memory_space<vmem>>, vector<1x32x1xf32>
    %7 = vector.shape_cast %6 : vector<1x32x1xf32> to vector<32x1xf32>
    %8 = vector.broadcast %7 : vector<32x1xf32> to vector<32x256xf32>
    %9 = arith.addf %5, %8 : vector<32x256xf32>
    %cst_7 = arith.constant 0.000000e+00 : f32
    %10 = vector.broadcast %cst_7 : f32 to vector<32x256xf32>
    %11 = arith.maximumf %9, %10 : vector<32x256xf32>
    %c1 = arith.constant 1 : index
    %c0_8 = arith.constant 0 : index
    %c0_9 = arith.constant 0 : index
    %12 = vector.load %arg1[%c1, %c0_8, %c0_9] : memref<6x32x32xbf16, #tpu.memory_space<vmem>>, vector<1x32x32xbf16>
    %13 = vector.shape_cast %12 : vector<1x32x32xbf16> to vector<32x32xbf16>
    %14 = arith.truncf %11 : vector<32x256xf32> to vector<32x256xbf16>
    %cst_10 = arith.constant dense<0.000000e+00> : vector<32x256xf32>
    %15 = tpu.matmul %13, %14, %cst_10 {dimension_numbers = #tpu.dot_dimension_numbers<[1], [0], [0], [1], [0, 0, 1, 1], [], []>} : vector<32x32xbf16>, vector<32x256xbf16>, vector<32x256xf32> -> vector<32x256xf32>
    %c1_11 = arith.constant 1 : index
    %c0_12 = arith.constant 0 : index
    %c0_13 = arith.constant 0 : index
    %16 = vector.load %arg2[%c1_11, %c0_12, %c0_13] : memref<6x32x1xf32, #tpu.memory_space<vmem>>, vector<1x32x1xf32>
    %17 = vector.shape_cast %16 : vector<1x32x1xf32> to vector<32x1xf32>
    %18 = vector.broadcast %17 : vector<32x1xf32> to vector<32x256xf32>
    %19 = arith.addf %15, %18 : vector<32x256xf32>
    %cst_14 = arith.constant 0.000000e+00 : f32
    %20 = vector.broadcast %cst_14 : f32 to vector<32x256xf32>
    %21 = arith.maximumf %19, %20 : vector<32x256xf32>
    %c2 = arith.constant 2 : index
    %c0_15 = arith.constant 0 : index
    %c0_16 = arith.constant 0 : index
    %22 = vector.load %arg1[%c2, %c0_15, %c0_16] : memref<6x32x32xbf16, #tpu.memory_space<vmem>>, vector<1x32x32xbf16>
    %23 = vector.shape_cast %22 : vector<1x32x32xbf16> to vector<32x32xbf16>
    %24 = arith.truncf %21 : vector<32x256xf32> to vector<32x256xbf16>
    %cst_17 = arith.constant dense<0.000000e+00> : vector<32x256xf32>
    %25 = tpu.matmul %23, %24, %cst_17 {dimension_numbers = #tpu.dot_dimension_numbers<[1], [0], [0], [1], [0, 0, 1, 1], [], []>} : vector<32x32xbf16>, vector<32x256xbf16>, vector<32x256xf32> -> vector<32x256xf32>
    %c2_18 = arith.constant 2 : index
    %c0_19 = arith.constant 0 : index
    %c0_20 = arith.constant 0 : index
    %26 = vector.load %arg2[%c2_18, %c0_19, %c0_20] : memref<6x32x1xf32, #tpu.memory_space<vmem>>, vector<1x32x1xf32>
    %27 = vector.shape_cast %26 : vector<1x32x1xf32> to vector<32x1xf32>
    %28 = vector.broadcast %27 : vector<32x1xf32> to vector<32x256xf32>
    %29 = arith.addf %25, %28 : vector<32x256xf32>
    %cst_21 = arith.constant 0.000000e+00 : f32
    %30 = vector.broadcast %cst_21 : f32 to vector<32x256xf32>
    %31 = arith.maximumf %29, %30 : vector<32x256xf32>
    %c3 = arith.constant 3 : index
    %c0_22 = arith.constant 0 : index
    %c0_23 = arith.constant 0 : index
    %32 = vector.load %arg1[%c3, %c0_22, %c0_23] : memref<6x32x32xbf16, #tpu.memory_space<vmem>>, vector<1x32x32xbf16>
    %33 = vector.shape_cast %32 : vector<1x32x32xbf16> to vector<32x32xbf16>
    %34 = arith.truncf %31 : vector<32x256xf32> to vector<32x256xbf16>
    %cst_24 = arith.constant dense<0.000000e+00> : vector<32x256xf32>
    %35 = tpu.matmul %33, %34, %cst_24 {dimension_numbers = #tpu.dot_dimension_numbers<[1], [0], [0], [1], [0, 0, 1, 1], [], []>} : vector<32x32xbf16>, vector<32x256xbf16>, vector<32x256xf32> -> vector<32x256xf32>
    %c3_25 = arith.constant 3 : index
    %c0_26 = arith.constant 0 : index
    %c0_27 = arith.constant 0 : index
    %36 = vector.load %arg2[%c3_25, %c0_26, %c0_27] : memref<6x32x1xf32, #tpu.memory_space<vmem>>, vector<1x32x1xf32>
    %37 = vector.shape_cast %36 : vector<1x32x1xf32> to vector<32x1xf32>
    %38 = vector.broadcast %37 : vector<32x1xf32> to vector<32x256xf32>
    %39 = arith.addf %35, %38 : vector<32x256xf32>
    %cst_28 = arith.constant 0.000000e+00 : f32
    %40 = vector.broadcast %cst_28 : f32 to vector<32x256xf32>
    %41 = arith.maximumf %39, %40 : vector<32x256xf32>
    %c4 = arith.constant 4 : index
    %c0_29 = arith.constant 0 : index
    %c0_30 = arith.constant 0 : index
    %42 = vector.load %arg1[%c4, %c0_29, %c0_30] : memref<6x32x32xbf16, #tpu.memory_space<vmem>>, vector<1x32x32xbf16>
    %43 = vector.shape_cast %42 : vector<1x32x32xbf16> to vector<32x32xbf16>
    %44 = arith.truncf %41 : vector<32x256xf32> to vector<32x256xbf16>
    %cst_31 = arith.constant dense<0.000000e+00> : vector<32x256xf32>
    %45 = tpu.matmul %43, %44, %cst_31 {dimension_numbers = #tpu.dot_dimension_numbers<[1], [0], [0], [1], [0, 0, 1, 1], [], []>} : vector<32x32xbf16>, vector<32x256xbf16>, vector<32x256xf32> -> vector<32x256xf32>
    %c4_32 = arith.constant 4 : index
    %c0_33 = arith.constant 0 : index
    %c0_34 = arith.constant 0 : index
    %46 = vector.load %arg2[%c4_32, %c0_33, %c0_34] : memref<6x32x1xf32, #tpu.memory_space<vmem>>, vector<1x32x1xf32>
    %47 = vector.shape_cast %46 : vector<1x32x1xf32> to vector<32x1xf32>
    %48 = vector.broadcast %47 : vector<32x1xf32> to vector<32x256xf32>
    %49 = arith.addf %45, %48 : vector<32x256xf32>
    %cst_35 = arith.constant 0.000000e+00 : f32
    %50 = vector.broadcast %cst_35 : f32 to vector<32x256xf32>
    %51 = arith.maximumf %49, %50 : vector<32x256xf32>
    %c5 = arith.constant 5 : index
    %c0_36 = arith.constant 0 : index
    %c0_37 = arith.constant 0 : index
    %52 = vector.load %arg1[%c5, %c0_36, %c0_37] : memref<6x32x32xbf16, #tpu.memory_space<vmem>>, vector<1x32x32xbf16>
    %53 = vector.shape_cast %52 : vector<1x32x32xbf16> to vector<32x32xbf16>
    %54 = arith.truncf %51 : vector<32x256xf32> to vector<32x256xbf16>
    %cst_38 = arith.constant dense<0.000000e+00> : vector<32x256xf32>
    %55 = tpu.matmul %53, %54, %cst_38 {dimension_numbers = #tpu.dot_dimension_numbers<[1], [0], [0], [1], [0, 0, 1, 1], [], []>} : vector<32x32xbf16>, vector<32x256xbf16>, vector<32x256xf32> -> vector<32x256xf32>
    %c5_39 = arith.constant 5 : index
    %c0_40 = arith.constant 0 : index
    %c0_41 = arith.constant 0 : index
    %56 = vector.load %arg2[%c5_39, %c0_40, %c0_41] : memref<6x32x1xf32, #tpu.memory_space<vmem>>, vector<1x32x1xf32>
    %57 = vector.shape_cast %56 : vector<1x32x1xf32> to vector<32x1xf32>
    %58 = vector.broadcast %57 : vector<32x1xf32> to vector<32x256xf32>
    %59 = arith.addf %55, %58 : vector<32x256xf32>
    %cst_42 = arith.constant 0.000000e+00 : f32
    %60 = vector.broadcast %cst_42 : f32 to vector<32x256xf32>
    %61 = arith.maximumf %59, %60 : vector<32x256xf32>
    %c0_43 = arith.constant 0 : index
    %c0_44 = arith.constant 0 : index
    %62 = vector.load %arg3[%c0_43, %c0_44] : memref<16x32xbf16, #tpu.memory_space<vmem>>, vector<16x32xbf16>
    %63 = arith.truncf %61 : vector<32x256xf32> to vector<32x256xbf16>
    %cst_45 = arith.constant dense<0.000000e+00> : vector<16x256xf32>
    %64 = tpu.matmul %62, %63, %cst_45 {dimension_numbers = #tpu.dot_dimension_numbers<[1], [0], [0], [1], [0, 0, 1, 1], [], []>} : vector<16x32xbf16>, vector<32x256xbf16>, vector<16x256xf32> -> vector<16x256xf32>
    %c0_46 = arith.constant 0 : index
    %c0_47 = arith.constant 0 : index
    %65 = vector.load %arg4[%c0_46, %c0_47] : memref<16x1xf32, #tpu.memory_space<vmem>>, vector<16x1xf32>
    %66 = vector.broadcast %65 : vector<16x1xf32> to vector<16x256xf32>
    %67 = arith.addf %64, %66 : vector<16x256xf32>
    %cst_48 = arith.constant 0.000000e+00 : f32
    %68 = vector.broadcast %cst_48 : f32 to vector<16x256xf32>
    %69 = arith.maximumf %67, %68 : vector<16x256xf32>
    %70 = tpu.transpose %69, [1, 0] : vector<16x256xf32> -> vector<256x16xf32>
    %c0_49 = arith.constant 0 : index
    %c0_50 = arith.constant 0 : index
    %71 = vector.load %arg5[%c0_49, %c0_50] : memref<256x16xf32, #tpu.memory_space<vmem>>, vector<256x16xf32>
    tpu.vector_store %arg5[%c0_49, %c0_50], %70 {strides = array<i32>} : memref<256x16xf32, #tpu.memory_space<vmem>>, vector<256x16xf32>,
    return
  }
}

</mosaic_0001>

<bundles_post_ra>
// kernel: metadata_module_forward.1
= control target key start
LH: loop header
LB: loop body
LE: loop exit
PB: predicated region body
PF: predicated region fallthrough
CT: control target
= control target key end

     0   :  { %v1091_v5 = vmov 0   ;;  %vm159_vm0 = vcmask 261120   ;;  %vm919_vm1 = vcmask 130048   ;;  %s1491_s0 = inlined_call_operand.vmem [shape: f32[256,32], index: 0, kind: input, shape index: {}]   ;;  %s1492_s2 = inlined_call_operand.vmem [shape: f32[6,32,1], index: 2, kind: input, shape index: {}]   ;;  %s1493_s1 = inlined_call_operand.vmem [shape: bf16[6,32,32], index: 1, kind: input, shape index: {}]   ;;  %s1494_s4 = inlined_call_operand.vmem [shape: f32[16,1], index: 4, kind: input, shape index: {}]   ;;  %s1495_s3 = inlined_call_operand.vmem [shape: bf16[16,32], index: 3, kind: input, shape index: {}]   ;;  %s1496_s5 = inlined_call_operand.vmem [shape: f32[256,16], index: 5, kind: output, shape index: {}]  }
   0x1   :  { %v21_v0 = vld [vmem:[%s1491_s0] sm:$0xff]  ;;  %v22_v2 = vld [vmem:[%s1491_s0 + $0x8] sm:$0xff]  ;;  %1076 = vset.pattern.permute.xlu1 %v1091_v5  ;;  %198 = vmatprep.mubr.bf16.mxu0 %v1091_v5  ;;  %v23_v7 = vld [vmem:[%s1491_s0 + $0x10] sm:$0xff] }
   0x2   :  { %v37_v1 = vld [vmem:[%s1491_s0 + $0x80] sm:$0xff]  ;;  %v38_v4 = vld [vmem:[%s1491_s0 + $0x88] sm:$0xff]  ;;  %309 = vmatprep.mubr.bf16.mxu1 %v1091_v5  ;;  %v39_v8 = vld [vmem:[%s1491_s0 + $0x90] sm:$0xff] }
   0x3   :  { %v1024_v3 = vpack.i.bf16 %v21_v0, %v37_v1  ;;  %v1026_v6 = vpack.i.bf16 %v22_v2, %v38_v4  ;;  %v1028_v9 = vpack.i.bf16 %v23_v7, %v39_v8  ;;  %v24_v10 = vld [vmem:[%s1491_s0 + $0x18] sm:$0xff]  ;;  %v127_v12 = vld [vmem:[%s1492_s2 + $0x10] sm:$0xff]  ;;  %v25_v14 = vld [vmem:[%s1491_s0 + $0x20] sm:$0xff] }
   0x4   :  { %v40_v11 = vld [vmem:[%s1491_s0 + $0x98] sm:$0xff]  ;;  %141 = vperm.xlu1 %1076, %v127_v12   ;;  %v41_v15 = vld [vmem:[%s1491_s0 + $0xa0] sm:$0xff]  ;;  %v26_v18 = vld [vmem:[%s1491_s0 + $0x28] sm:$0xff] }
   0x5   :  { %1025 = vxpose.xlu0.b32.start [1/16] (narrow) %v1024_v3, 32  ;;  %v1030_v13 = vpack.i.bf16 %v24_v10, %v40_v11  ;;  %v128_v16 = vld [vmem:[%s1492_s2 + $0x18] sm:$0xff]  ;;  %v1032_v17 = vpack.i.bf16 %v25_v14, %v41_v15  ;;  %v42_v19 = vld [vmem:[%s1491_s0 + $0xa8] sm:$0xff]  ;;  %v125_v20 = vld [vmem:[%s1492_s2] sm:$0xff] }
   0x6   :  { %v1034_v21 = vpack.i.bf16 %v26_v18, %v42_v19  ;;  %v27_v22 = vld [vmem:[%s1491_s0 + $0x30] sm:$0xff]  ;;  %v126_v24 = vld [vmem:[%s1492_s2 + $0x8] sm:$0xff]  ;;  %v28_v26 = vld [vmem:[%s1491_s0 + $0x38] sm:$0xff] }
   0x7   :  { %v43_v23 = vld [vmem:[%s1491_s0 + $0xb0] sm:$0xff]  ;;  %v44_v27 = vld [vmem:[%s1491_s0 + $0xb8] sm:$0xff]  ;;  %v29_v29 = vld [vmem:[%s1491_s0 + $0x40] sm:$0xff] }
   0x8   :  { %146 = vperm.xlu1 %1076, %v128_v16   ;;  %v1036_v25 = vpack.i.bf16 %v27_v22, %v43_v23  ;;  %v966_v28 = vld [vmem:[%s1492_s2 + $0x30] sm:$0xff]  ;;  %v45_v30 = vld [vmem:[%s1491_s0 + $0xc0] sm:$0xff]  ;;  %v1038_v31 = vpack.i.bf16 %v28_v26, %v44_v27  ;;  %v967_v32 = vld [vmem:[%s1492_s2 + $0x38] sm:$0xff] }
   0x9   :  { %1027 = vxpose.xlu0.b32.cont [2/16] (narrow) %v1026_v6, 32  ;;  %v1040_v33 = vpack.i.bf16 %v29_v29, %v45_v30  ;;  %v30_v34 = vld [vmem:[%s1491_s0 + $0x48] sm:$0xff]  ;;  %v964_v36 = vld [vmem:[%s1492_s2 + $0x20] sm:$0xff]  ;;  %v31_v38 = vld [vmem:[%s1491_s0 + $0x50] sm:$0xff] }
   0xa   :  { %v46_v35 = vld [vmem:[%s1491_s0 + $0xc8] sm:$0xff]  ;;  %v47_v39 = vld [vmem:[%s1491_s0 + $0xd0] sm:$0xff]  ;;  %v32_v42 = vld [vmem:[%s1491_s0 + $0x58] sm:$0xff] }
   0xb   :  { %v1042_v37 = vpack.i.bf16 %v30_v34, %v46_v35  ;;  %v965_v40 = vld [vmem:[%s1492_s2 + $0x28] sm:$0xff]  ;;  %v1044_v41 = vpack.i.bf16 %v31_v38, %v47_v39  ;;  %v48_v43 = vld [vmem:[%s1491_s0 + $0xd8] sm:$0xff]  ;;  %v978_v44 = vld [vmem:[%s1492_s2 + $0x50] sm:$0xff] }
   0xc   :  { %131 = vperm.xlu1 %1076, %v125_v20   ;;  %v1046_v45 = vpack.i.bf16 %v32_v42, %v48_v43  ;;  %v33_v46 = vld [vmem:[%s1491_s0 + $0x60] sm:$0xff]  ;;  %v979_v48 = vld [vmem:[%s1492_s2 + $0x58] sm:$0xff]  ;;  %v34_v50 = vld [vmem:[%s1491_s0 + $0x68] sm:$0xff] }
   0xd   :  { %1029 = vxpose.xlu0.b32.cont [3/16] (narrow) %v1028_v9, 32  ;;  %v49_v47 = vld [vmem:[%s1491_s0 + $0xe0] sm:$0xff]  ;;  %v50_v51 = vld [vmem:[%s1491_s0 + $0xe8] sm:$0xff]  ;;  %v35_v54 = vld [vmem:[%s1491_s0 + $0x70] sm:$0xff] }
   0xe   :  { %v1048_v49 = vpack.i.bf16 %v33_v46, %v49_v47  ;;  %v976_v52 = vld [vmem:[%s1492_s2 + $0x40] sm:$0xff]  ;;  %v1050_v53 = vpack.i.bf16 %v34_v50, %v50_v51  ;;  %v51_v55 = vld [vmem:[%s1491_s0 + $0xf0] sm:$0xff]  ;;  %v977_v56 = vld [vmem:[%s1492_s2 + $0x48] sm:$0xff] }
   0xf   :  { %v1052_v57 = vpack.i.bf16 %v35_v54, %v51_v55  ;;  %v36_v58 = vld [vmem:[%s1491_s0 + $0x78] sm:$0xff]  ;;  %v990_v60 = vld [vmem:[%s1492_s2 + $0x70] sm:$0xff]  ;;  %v988_v63 = vld [vmem:[%s1492_s2 + $0x60] sm:$0xff] }
  0x10   :  { %136 = vperm.xlu1 %1076, %v126_v24   ;;  %v52_v59 = vld [vmem:[%s1491_s0 + $0xf8] sm:$0xff]  ;;  %v989_v0 = vld [vmem:[%s1492_s2 + $0x68] sm:$0xff]  ;;  %v1000_v2 = vld [vmem:[%s1492_s2 + $0x80] sm:$0xff] }
  0x11   :  { %1031 = vxpose.xlu0.b32.cont [4/16] (narrow) %v1030_v13, 32  ;;  %v1054_v61 = vpack.i.bf16 %v36_v58, %v52_v59  ;;  %v991_v62 = vld [vmem:[%s1492_s2 + $0x78] sm:$0xff]  ;;  %v1001_v3 = vld [vmem:[%s1492_s2 + $0x88] sm:$0xff]  ;;  %v1014_v4 = vld [vmem:[%s1492_s2 + $0xb0] sm:$0xff] }
  0x12   :  { %v1003_v1 = vld [vmem:[%s1492_s2 + $0x98] sm:$0xff]  ;;  %v1012_v7 = vld [vmem:[%s1492_s2 + $0xa0] sm:$0xff]  ;;  %v1013_v8 = vld [vmem:[%s1492_s2 + $0xa8] sm:$0xff] }
  0x13   :  { %v1015_v6 = vld [vmem:[%s1492_s2 + $0xb8] sm:$0xff]  ;;  %v788_v9 = vld [vmem:[%s1494_s4] sm:$0xff]  ;;  %v789_v10 = vld [vmem:[%s1494_s4 + $0x8] sm:$0xff] }
  0x14   :  { %253 = vperm.xlu1 %1076, %v966_v28   ;;  %v1078_v27 = vld [vmem:[%s1493_s1] sm:$0xff]   ;;  %v1079_v28 = vld [vmem:[%s1493_s1 + $0x8] sm:$0xff]  }
  0x15   :  { %1033 = vxpose.xlu0.b32.cont [5/16] (narrow) %v1032_v17, 32 }
  0x18   :  { %258 = vperm.xlu1 %1076, %v967_v32  }
  0x19   :  { %1035 = vxpose.xlu0.b32.cont [6/16] (narrow) %v1034_v21, 32 }
  0x1c   :  { %243 = vperm.xlu1 %1076, %v964_v36  }
  0x1d   :  { %1037 = vxpose.xlu0.b32.cont [7/16] (narrow) %v1036_v25, 32 }
  0x20   :  { %248 = vperm.xlu1 %1076, %v965_v40  }
  0x21   :  { %1039 = vxpose.xlu0.b32.cont [8/16] (narrow) %v1038_v31, 32 }
  0x24   :  { %364 = vperm.xlu1 %1076, %v978_v44  }
  0x25   :  { %1041 = vxpose.xlu0.b32.cont [9/16] (narrow) %v1040_v33, 32 }
  0x28   :  { %369 = vperm.xlu1 %1076, %v979_v48  }
  0x29   :  { %1043 = vxpose.xlu0.b32.cont [10/16] (narrow) %v1042_v37, 32 }
  0x2c   :  { %354 = vperm.xlu1 %1076, %v976_v52  }
  0x2d   :  { %1045 = vxpose.xlu0.b32.cont [11/16] (narrow) %v1044_v41, 32 }
  0x30   :  { %359 = vperm.xlu1 %1076, %v977_v56  }
  0x31   :  { %1047 = vxpose.xlu0.b32.cont [12/16] (narrow) %v1046_v45, 32 }
  0x34   :  { %475 = vperm.xlu1 %1076, %v990_v60  }
  0x35   :  { %1049 = vxpose.xlu0.b32.cont [13/16] (narrow) %v1048_v49, 32 }
  0x38   :  { %480 = vperm.xlu1 %1076, %v991_v62   ;;  %v1081_v62 = vld [vmem:[%s1493_s1 + $0x18] sm:$0xff]  }
  0x39   :  { %1051 = vxpose.xlu0.b32.cont [14/16] (narrow) %v1050_v53, 32 }
  0x3c   :  { %465 = vperm.xlu1 %1076, %v988_v63  }
  0x3d   :  { %1053 = vxpose.xlu0.b32.cont [15/16] (narrow) %v1052_v57, 32 }
  0x40   :  { %470 = vperm.xlu1 %1076, %v989_v0  }
  0x41   :  { %1055 = vxpose.xlu0.b32.end [16/16] (narrow) %v1054_v61, 32  ;;  %v1080_v61 = vld [vmem:[%s1493_s1 + $0x10] sm:$0xff]  }
  0x44   :  { %591 = vperm.xlu1 %1076, %v1003_v1  }
  0x48   :  { %576 = vperm.xlu1 %1076, %v1000_v2  }
  0x4c   :  { %581 = vperm.xlu1 %1076, %v1001_v3  }
  0x50   :  { %697 = vperm.xlu1 %1076, %v1014_v4  }
  0x54   :  { %702 = vperm.xlu1 %1076, %v1015_v6  }
  0x58   :  { %687 = vperm.xlu1 %1076, %v1012_v7  }
  0x5c   :  { %692 = vperm.xlu1 %1076, %v1013_v8  }
  0x60   :  { %792 = vperm.xlu1 %1076, %v788_v9  }
  0x64   :  { %797 = vperm.xlu1 %1076, %v789_v10  }
  0x6a   :  { %1077 = vset.pattern.permute.xlu0 %v1091_v5 }
  0x7f   :  { %v142_v29 = vpop.permute.xlu1 %141 }
  0x81   :  { %v1056_v11 = vpop.trf.xlu0 }
  0x82   :  { %v1057_v20 = vunpack.i.l.bf16 %v1056_v11  ;;  %v1060_v25 = vunpack.i.h.bf16 %v1056_v11 }
  0x83   :  { %v147_v30 = vpop.permute.xlu1 %146 }
  0x85   :  { %v1061_v12 = vpop.trf.xlu0 }
  0x86   :  { %v1062_v14 = vunpack.i.l.bf16 %v1061_v12  ;;  %v1065_v23 = vunpack.i.h.bf16 %v1061_v12 }
  0x87   :  { %v132_v34 = vpop.permute.xlu1 %131 }
  0x88   :  { %v122_v24 = vpack.c.bf16 %v1062_v14, %v1057_v20  ;;  %v121_v26 = vpack.c.bf16 %v1065_v23, %v1060_v25 }
  0x89   :  { %v1066_v13 = vpop.trf.xlu0 }
  0x8a   :  { %v1067_v16 = vunpack.i.l.bf16 %v1066_v13  ;;  %v1070_v17 = vunpack.i.h.bf16 %v1066_v13 }
  0x8b   :  { %v137_v38 = vpop.permute.xlu1 %136 }
  0x8d   :  { %v1071_v15 = vpop.trf.xlu0 }
  0x8e   :  { %v1072_v18 = vunpack.i.l.bf16 %v1071_v15  ;;  %v1075_v19 = vunpack.i.h.bf16 %v1071_v15 }
  0x8f   :  { %v254_v63 = vpop.permute.xlu1 %253 }
  0x90   :  { %v124_v21 = vpack.c.bf16 %v1072_v18, %v1067_v16  ;;  %v123_v22 = vpack.c.bf16 %v1075_v19, %v1070_v17 }
  0x92   :  { %178 = vmatprep.subr.bf16.mxu0 %v124_v21 }
  0x93   :  { %179 = vmatpush1.bf16.msra.mxu0 %v123_v22  ;;  %v259_v0 = vpop.permute.xlu1 %258 }
  0x94   :  { %180 = vmatprep.subr.bf16.mxu0 %v122_v24 }
  0x97   :  { %181 = vmatpush1.bf16.msra.mxu0 %v121_v26  ;;  %v244_v4 = vpop.permute.xlu1 %243 }
  0x9a   :  { %958 = vmatmul.mubr.msk.bf16.vlgmr.msra.gmra.mxu0 %vm159_vm0, %v1078_v27 }
  0x9b   :  { %208 = vmatprep.mubr.bf16.mxu0 %v1091_v5  ;;  %v249_v9 = vpop.permute.xlu1 %248 }
  0xa2   :  { %959 = vmatmul.mubr.msk.bf16.gmra.mxu0 %vm159_vm0, %v1079_v28 }
  0xa3   :  { %420 = vmatprep.mubr.bf16.mxu0 %v1091_v5 }
 0x15a   :  { %v200_v31 = vpop.f32.mrf.mxu0 }
 0x15b   :  { %v201_v52 = vadd.f32 %v200_v31, %v132_v34 }
 0x15c   :  { %v202_v32 = vpop.f32.mrf.mxu0 }
 0x15d   :  { %v203_v45 = vadd.f32 %v202_v32, %v132_v34  ;;  %v219_v59 = vmax.f32 %v201_v52, 0.0  ;;  %v1082_v32 = vld [vmem:[%s1493_s1 + $0x20] sm:$0xff]   ;;  %v365_v34 = vpop.permute.xlu1 %364 }
 0x15e   :  { %v204_v33 = vpop.f32.mrf.mxu0 }
 0x15f   :  { %v205_v47 = vadd.f32 %v204_v33, %v137_v38  ;;  %v220_v54 = vmax.f32 %v203_v45, 0.0  ;;  %v1083_v33 = vld [vmem:[%s1493_s1 + $0x28] sm:$0xff]  }
 0x160   :  { %v206_v35 = vpop.f32.mrf.mxu0 }
 0x161   :  { %v207_v40 = vadd.f32 %v206_v35, %v137_v38  ;;  %v221_v56 = vmax.f32 %v205_v47, 0.0  ;;  %v370_v35 = vpop.permute.xlu1 %369 }
 0x162   :  { %v210_v36 = vpop.f32.mrf.mxu0 }
 0x163   :  { %v211_v43 = vadd.f32 %v210_v36, %v142_v29  ;;  %v222_v49 = vmax.f32 %v207_v40, 0.0  ;;  %v232_v60 = vpack.c.bf16 %v221_v56, %v219_v59 }
 0x164   :  { %v212_v37 = vpop.f32.mrf.mxu0 }
 0x165   :  { %v213_v41 = vadd.f32 %v212_v37, %v142_v29  ;;  %v223_v53 = vmax.f32 %v211_v43, 0.0  ;;  %v233_v58 = vpack.c.bf16 %v222_v49, %v220_v54 }
 0x166   :  { %v214_v39 = vpop.f32.mrf.mxu0 }
 0x167   :  { %v215_v42 = vadd.f32 %v214_v39, %v147_v30  ;;  %v224_v50 = vmax.f32 %v213_v41, 0.0  ;;  %v355_v39 = vpop.permute.xlu1 %354 }
 0x168   :  { %v216_v44 = vpop.f32.mrf.mxu0 }
 0x169   :  { %v217_v46 = vadd.f32 %v216_v44, %v147_v30  ;;  %v225_v48 = vmax.f32 %v215_v42, 0.0 }
 0x16b   :  { %v226_v51 = vmax.f32 %v217_v46, 0.0  ;;  %v234_v57 = vpack.c.bf16 %v225_v48, %v223_v53  ;;  %v360_v43 = vpop.permute.xlu1 %359 }
 0x16d   :  { %v235_v55 = vpack.c.bf16 %v226_v51, %v224_v50 }
 0x16f   :  { %289 = vmatprep.subr.bf16.mxu1 %v235_v55 }
 0x170   :  { %290 = vmatpush1.bf16.msra.mxu1 %v234_v57 }
 0x171   :  { %291 = vmatprep.subr.bf16.mxu1 %v233_v58 }
 0x174   :  { %292 = vmatpush1.bf16.msra.mxu1 %v232_v60 }
 0x177   :  { %970 = vmatmul.mubr.msk.bf16.vlgmr.msra.gmra.mxu1 %vm159_vm0, %v1080_v61 }
 0x178   :  { %319 = vmatprep.mubr.bf16.mxu1 %v1091_v5 }
 0x17f   :  { %971 = vmatmul.mubr.msk.bf16.gmra.mxu1 %vm159_vm0, %v1081_v62 }
 0x180   :  { %531 = vmatprep.mubr.bf16.mxu1 %v1091_v5 }
 0x237   :  { %v311_v1 = vpop.f32.mrf.mxu1 }
 0x238   :  { %v312_v23 = vadd.f32 %v311_v1, %v244_v4 }
 0x239   :  { %v313_v2 = vpop.f32.mrf.mxu1 }
 0x23a   :  { %v314_v16 = vadd.f32 %v313_v2, %v244_v4  ;;  %v330_v30 = vmax.f32 %v312_v23, 0.0  ;;  %v1084_v2 = vld [vmem:[%s1493_s1 + $0x30] sm:$0xff]  }
 0x23b   :  { %v315_v3 = vpop.f32.mrf.mxu1  ;;  %v1002_v4 = vld [vmem:[%s1492_s2 + $0x90] sm:$0xff] }
 0x23c   :  { %v316_v18 = vadd.f32 %v315_v3, %v249_v9  ;;  %v331_v25 = vmax.f32 %v314_v16, 0.0  ;;  %v1085_v3 = vld [vmem:[%s1493_s1 + $0x38] sm:$0xff]   ;;  %586 = vperm.xlu0 %1077, %v1002_v4  }
 0x23d   :  { %v317_v6 = vpop.f32.mrf.mxu1 }
 0x23e   :  { %v318_v11 = vadd.f32 %v317_v6, %v249_v9  ;;  %v332_v27 = vmax.f32 %v316_v18, 0.0  ;;  %v476_v6 = vpop.permute.xlu1 %475 }
 0x23f   :  { %v321_v7 = vpop.f32.mrf.mxu1 }
 0x240   :  { %v322_v14 = vadd.f32 %v321_v7, %v254_v63  ;;  %v333_v20 = vmax.f32 %v318_v11, 0.0  ;;  %v343_v31 = vpack.c.bf16 %v332_v27, %v330_v30 }
 0x241   :  { %v323_v8 = vpop.f32.mrf.mxu1 }
 0x242   :  { %v324_v12 = vadd.f32 %v323_v8, %v254_v63  ;;  %v334_v24 = vmax.f32 %v322_v14, 0.0  ;;  %v344_v29 = vpack.c.bf16 %v333_v20, %v331_v25  ;;  %v481_v7 = vpop.permute.xlu1 %480 }
 0x243   :  { %v325_v10 = vpop.f32.mrf.mxu1 }
 0x244   :  { %v326_v13 = vadd.f32 %v325_v10, %v259_v0  ;;  %v335_v21 = vmax.f32 %v324_v12, 0.0 }
 0x245   :  { %v327_v15 = vpop.f32.mrf.mxu1 }
 0x246   :  { %v328_v17 = vadd.f32 %v327_v15, %v259_v0  ;;  %v336_v19 = vmax.f32 %v326_v13, 0.0  ;;  %v466_v11 = vpop.permute.xlu1 %465 }
 0x248   :  { %v337_v22 = vmax.f32 %v328_v17, 0.0  ;;  %v345_v28 = vpack.c.bf16 %v336_v19, %v334_v24 }
 0x24a   :  { %v346_v26 = vpack.c.bf16 %v337_v22, %v335_v21  ;;  %v471_v15 = vpop.permute.xlu1 %470 }
 0x24c   :  { %400 = vmatprep.subr.bf16.mxu0 %v346_v26 }
 0x24d   :  { %401 = vmatpush1.bf16.msra.mxu0 %v345_v28 }
 0x24e   :  { %402 = vmatprep.subr.bf16.mxu0 %v344_v29 }
 0x251   :  { %403 = vmatpush1.bf16.msra.mxu0 %v343_v31 }
 0x254   :  { %982 = vmatmul.mubr.msk.bf16.vlgmr.msra.gmra.mxu0 %vm159_vm0, %v1082_v32 }
 0x255   :  { %430 = vmatprep.mubr.bf16.mxu0 %v1091_v5 }
 0x25c   :  { %983 = vmatmul.mubr.msk.bf16.gmra.mxu0 %vm159_vm0, %v1083_v33 }
 0x25d   :  { %642 = vmatprep.mubr.bf16.mxu0 %v1091_v5 }
 0x314   :  { %v422_v36 = vpop.f32.mrf.mxu0 }
 0x315   :  { %v423_v57 = vadd.f32 %v422_v36, %v355_v39 }
 0x316   :  { %v424_v37 = vpop.f32.mrf.mxu0 }
 0x317   :  { %v425_v50 = vadd.f32 %v424_v37, %v355_v39  ;;  %v441_v0 = vmax.f32 %v423_v57, 0.0  ;;  %v1087_v39 = vld [vmem:[%s1493_s1 + $0x48] sm:$0xff]  }
 0x318   :  { %v426_v38 = vpop.f32.mrf.mxu0 }
 0x319   :  { %v427_v52 = vadd.f32 %v426_v38, %v360_v43  ;;  %v442_v59 = vmax.f32 %v425_v50, 0.0  ;;  %v1086_v38 = vld [vmem:[%s1493_s1 + $0x40] sm:$0xff]  }
 0x31a   :  { %v428_v40 = vpop.f32.mrf.mxu0 }
 0x31b   :  { %v429_v45 = vadd.f32 %v428_v40, %v360_v43  ;;  %v443_v61 = vmax.f32 %v427_v52, 0.0  ;;  %v592_v40 = vpop.permute.xlu1 %591 }
 0x31c   :  { %v432_v41 = vpop.f32.mrf.mxu0 }
 0x31d   :  { %v433_v48 = vadd.f32 %v432_v41, %v365_v34  ;;  %v444_v54 = vmax.f32 %v429_v45, 0.0  ;;  %v454_v1 = vpack.c.bf16 %v443_v61, %v441_v0 }
 0x31e   :  { %v434_v42 = vpop.f32.mrf.mxu0 }
 0x31f   :  { %v435_v46 = vadd.f32 %v434_v42, %v365_v34  ;;  %v445_v58 = vmax.f32 %v433_v48, 0.0  ;;  %v455_v63 = vpack.c.bf16 %v444_v54, %v442_v59  ;;  %v587_v48 = vpop.permute.xlu0 %586 }
 0x320   :  { %v436_v44 = vpop.f32.mrf.mxu0 }
 0x321   :  { %v437_v47 = vadd.f32 %v436_v44, %v370_v35  ;;  %v446_v55 = vmax.f32 %v435_v46, 0.0  ;;  %v577_v44 = vpop.permute.xlu1 %576 }
 0x322   :  { %v438_v49 = vpop.f32.mrf.mxu0 }
 0x323   :  { %v439_v51 = vadd.f32 %v438_v49, %v370_v35  ;;  %v447_v53 = vmax.f32 %v437_v47, 0.0 }
 0x325   :  { %v448_v56 = vmax.f32 %v439_v51, 0.0  ;;  %v456_v62 = vpack.c.bf16 %v447_v53, %v445_v58  ;;  %v582_v49 = vpop.permute.xlu1 %581 }
 0x327   :  { %v457_v60 = vpack.c.bf16 %v448_v56, %v446_v55 }
 0x329   :  { %511 = vmatprep.subr.bf16.mxu1 %v457_v60 }
 0x32a   :  { %512 = vmatpush1.bf16.msra.mxu1 %v456_v62 }
 0x32b   :  { %513 = vmatprep.subr.bf16.mxu1 %v455_v63 }
 0x32e   :  { %514 = vmatpush1.bf16.msra.mxu1 %v454_v1 }
 0x331   :  { %994 = vmatmul.mubr.msk.bf16.vlgmr.msra.gmra.mxu1 %vm159_vm0, %v1084_v2 }
 0x332   :  { %541 = vmatprep.mubr.bf16.mxu1 %v1091_v5 }
 0x339   :  { %995 = vmatmul.mubr.msk.bf16.gmra.mxu1 %vm159_vm0, %v1085_v3 }
 0x33a   :  { %753 = vmatprep.mubr.bf16.mxu1 %v1091_v5 }
 0x3f1   :  { %v533_v8 = vpop.f32.mrf.mxu1 }
 0x3f2   :  { %v534_v29 = vadd.f32 %v533_v8, %v466_v11 }
 0x3f3   :  { %v535_v9 = vpop.f32.mrf.mxu1 }
 0x3f4   :  { %v536_v22 = vadd.f32 %v535_v9, %v466_v11  ;;  %v552_v36 = vmax.f32 %v534_v29, 0.0  ;;  %v1088_v9 = vld [vmem:[%s1493_s1 + $0x50] sm:$0xff]   ;;  %v698_v11 = vpop.permute.xlu1 %697 }
 0x3f5   :  { %v537_v10 = vpop.f32.mrf.mxu1 }
 0x3f6   :  { %v538_v24 = vadd.f32 %v537_v10, %v471_v15  ;;  %v553_v31 = vmax.f32 %v536_v22, 0.0  ;;  %v1089_v10 = vld [vmem:[%s1493_s1 + $0x58] sm:$0xff]  }
 0x3f7   :  { %v539_v12 = vpop.f32.mrf.mxu1 }
 0x3f8   :  { %v540_v17 = vadd.f32 %v539_v12, %v471_v15  ;;  %v554_v33 = vmax.f32 %v538_v24, 0.0  ;;  %v703_v12 = vpop.permute.xlu1 %702 }
 0x3f9   :  { %v543_v13 = vpop.f32.mrf.mxu1 }
 0x3fa   :  { %v544_v20 = vadd.f32 %v543_v13, %v476_v6  ;;  %v555_v26 = vmax.f32 %v540_v17, 0.0  ;;  %v565_v37 = vpack.c.bf16 %v554_v33, %v552_v36 }
 0x3fb   :  { %v545_v14 = vpop.f32.mrf.mxu1 }
 0x3fc   :  { %v546_v18 = vadd.f32 %v545_v14, %v476_v6  ;;  %v556_v30 = vmax.f32 %v544_v20, 0.0  ;;  %v566_v35 = vpack.c.bf16 %v555_v26, %v553_v31 }
 0x3fd   :  { %v547_v16 = vpop.f32.mrf.mxu1 }
 0x3fe   :  { %v548_v19 = vadd.f32 %v547_v16, %v481_v7  ;;  %v557_v27 = vmax.f32 %v546_v18, 0.0  ;;  %v688_v16 = vpop.permute.xlu1 %687 }
 0x3ff   :  { %v549_v21 = vpop.f32.mrf.mxu1 }
 0x400   :  { %v550_v23 = vadd.f32 %v549_v21, %v481_v7  ;;  %v558_v25 = vmax.f32 %v548_v19, 0.0 }
 0x402   :  { %v559_v28 = vmax.f32 %v550_v23, 0.0  ;;  %v567_v34 = vpack.c.bf16 %v558_v25, %v556_v30  ;;  %v693_v20 = vpop.permute.xlu1 %692 }
 0x404   :  { %v568_v32 = vpack.c.bf16 %v559_v28, %v557_v27 }
 0x406   :  { %622 = vmatprep.subr.bf16.mxu0 %v568_v32 }
 0x407   :  { %623 = vmatpush1.bf16.msra.mxu0 %v567_v34 }
 0x408   :  { %624 = vmatprep.subr.bf16.mxu0 %v566_v35 }
 0x40b   :  { %625 = vmatpush1.bf16.msra.mxu0 %v565_v37 }
 0x40e   :  { %1006 = vmatmul.mubr.msk.bf16.vlgmr.msra.gmra.mxu0 %vm159_vm0, %v1086_v38 }
 0x40f   :  { %652 = vmatprep.mubr.bf16.mxu0 %v1091_v5 }
 0x416   :  { %1007 = vmatmul.mubr.msk.bf16.gmra.mxu0 %vm159_vm0, %v1087_v39 }
 0x417   :  { %840 = vmatprep.mubr.bf16.mxu0 %v1091_v5 }
 0x4ce   :  { %v644_v41 = vpop.f32.mrf.mxu0 }
 0x4cf   :  { %v645_v63 = vadd.f32 %v644_v41, %v577_v44 }
 0x4d0   :  { %v646_v42 = vpop.f32.mrf.mxu0 }
 0x4d1   :  { %v647_v56 = vadd.f32 %v646_v42, %v577_v44  ;;  %v663_v7 = vmax.f32 %v645_v63, 0.0  ;;  %v1090_v42 = vld [vmem:[%s1495_s3] sm:$0xff]  }
 0x4d2   :  { %v648_v43 = vpop.f32.mrf.mxu0 }
 0x4d3   :  { %v649_v58 = vadd.f32 %v648_v43, %v582_v49  ;;  %v664_v1 = vmax.f32 %v647_v56, 0.0  ;;  %v793_v43 = vpop.permute.xlu1 %792 }
 0x4d4   :  { %v650_v45 = vpop.f32.mrf.mxu0 }
 0x4d5   :  { %v651_v51 = vadd.f32 %v650_v45, %v582_v49  ;;  %v665_v3 = vmax.f32 %v649_v58, 0.0 }
 0x4d6   :  { %v654_v46 = vpop.f32.mrf.mxu0 }
 0x4d7   :  { %v655_v54 = vadd.f32 %v654_v46, %v587_v48  ;;  %v666_v60 = vmax.f32 %v651_v51, 0.0  ;;  %v676_v8 = vpack.c.bf16 %v665_v3, %v663_v7  ;;  %v798_v49 = vpop.permute.xlu1 %797 }
 0x4d8   :  { %v656_v47 = vpop.f32.mrf.mxu0 }
 0x4d9   :  { %v657_v52 = vadd.f32 %v656_v47, %v587_v48  ;;  %v667_v0 = vmax.f32 %v655_v54, 0.0  ;;  %v677_v6 = vpack.c.bf16 %v666_v60, %v664_v1 }
 0x4da   :  { %v658_v50 = vpop.f32.mrf.mxu0 }
 0x4db   :  { %v659_v53 = vadd.f32 %v658_v50, %v592_v40  ;;  %v668_v61 = vmax.f32 %v657_v52, 0.0 }
 0x4dc   :  { %v660_v55 = vpop.f32.mrf.mxu0 }
 0x4dd   :  { %v661_v57 = vadd.f32 %v660_v55, %v592_v40  ;;  %v669_v59 = vmax.f32 %v659_v53, 0.0 }
 0x4df   :  { %v670_v62 = vmax.f32 %v661_v57, 0.0  ;;  %v678_v4 = vpack.c.bf16 %v669_v59, %v667_v0 }
 0x4e1   :  { %v679_v2 = vpack.c.bf16 %v670_v62, %v668_v61 }
 0x4e3   :  { %733 = vmatprep.subr.bf16.mxu1 %v679_v2 }
 0x4e4   :  { %734 = vmatpush1.bf16.msra.mxu1 %v678_v4 }
 0x4e5   :  { %735 = vmatprep.subr.bf16.mxu1 %v677_v6 }
 0x4e8   :  { %736 = vmatpush1.bf16.msra.mxu1 %v676_v8 }
 0x4eb   :  { %1018 = vmatmul.mubr.msk.bf16.vlgmr.msra.gmra.mxu1 %vm159_vm0, %v1088_v9 }
 0x4ec   :  { %763 = vmatprep.mubr.bf16.mxu1 %v1091_v5 }
 0x4f3   :  { %1019 = vmatmul.mubr.msk.bf16.gmra.mxu1 %vm159_vm0, %v1089_v10 }
 0x5ab   :  { %v755_v13 = vpop.f32.mrf.mxu1 }
 0x5ac   :  { %v756_v33 = vadd.f32 %v755_v13, %v688_v16 }
 0x5ad   :  { %v757_v14 = vpop.f32.mrf.mxu1 }
 0x5ae   :  { %v758_v26 = vadd.f32 %v757_v14, %v688_v16  ;;  %v774_v40 = vmax.f32 %v756_v33, 0.0 }
 0x5af   :  { %v759_v15 = vpop.f32.mrf.mxu1 }
 0x5b0   :  { %v760_v28 = vadd.f32 %v759_v15, %v693_v20  ;;  %v775_v35 = vmax.f32 %v758_v26, 0.0 }
 0x5b1   :  { %v761_v17 = vpop.f32.mrf.mxu1 }
 0x5b2   :  { %v762_v22 = vadd.f32 %v761_v17, %v693_v20  ;;  %v776_v37 = vmax.f32 %v760_v28, 0.0 }
 0x5b3   :  { %v765_v18 = vpop.f32.mrf.mxu1 }
 0x5b4   :  { %v766_v24 = vadd.f32 %v765_v18, %v698_v11  ;;  %v777_v30 = vmax.f32 %v762_v22, 0.0  ;;  %v784_v41 = vpack.c.bf16 %v776_v37, %v774_v40 }
 0x5b5   :  { %v767_v19 = vpop.f32.mrf.mxu1 }
 0x5b6   :  { %v768_v23 = vadd.f32 %v767_v19, %v698_v11  ;;  %v778_v34 = vmax.f32 %v766_v24, 0.0  ;;  %v785_v39 = vpack.c.bf16 %v777_v30, %v775_v35 }
 0x5b7   :  { %v769_v21 = vpop.f32.mrf.mxu1 }
 0x5b8   :  { %v770_v5 = vadd.f32 %v769_v21, %v703_v12  ;;  %v779_v31 = vmax.f32 %v768_v23, 0.0 }
 0x5b9   :  { %v771_v25 = vpop.f32.mrf.mxu1 }
 0x5ba   :  { %v772_v27 = vadd.f32 %v771_v25, %v703_v12  ;;  %v780_v29 = vmax.f32 %v770_v5, 0.0 }
 0x5bc   :  { %v781_v32 = vmax.f32 %v772_v27, 0.0  ;;  %v786_v38 = vpack.c.bf16 %v780_v29, %v778_v34 }
 0x5be   :  { %v787_v36 = vpack.c.bf16 %v781_v32, %v779_v31 }
 0x5c0   :  { %820 = vmatprep.subr.bf16.mxu0 %v787_v36 }
 0x5c1   :  { %821 = vmatpush1.bf16.msra.mxu0 %v786_v38 }
 0x5c2   :  { %822 = vmatprep.subr.bf16.mxu0 %v785_v39 }
 0x5c5   :  { %823 = vmatpush1.bf16.msra.mxu0 %v784_v41 }
 0x5c8   :  { %1021 = vmatmul.mubr.msk.bf16.vlgmr.msra.gmra.mxu0 %vm159_vm0, %v1090_v42 }
 0x688   :  { %v842_v44 = vpop.f32.mrf.mxu0 }
 0x689   :  { %v843_v45 = vadd.f32 %v842_v44, %v793_v43 }
 0x68a   :  { %v844_v46 = vpop.f32.mrf.mxu0 }
 0x68b   :  { %v851_v47 = vmax.f32 %v843_v45, 0.0  ;;  %v845_v48 = vadd.f32 %v844_v46, %v793_v43 }
 0x68c   :  { %v846_v50 = vpop.f32.mrf.mxu0 }
 0x68d   :  { %v852_v51 = vmax.f32 %v845_v48, 0.0  ;;  %v847_v52 = vadd.f32 %v846_v50, %v798_v49  ;;  %855 = vxpose.xlu1.b32.start [1/2] (short) %v851_v47, 128 }
 0x68e   :  { %v848_v53 = vpop.f32.mrf.mxu0 }
 0x68f   :  { %v853_v54 = vmax.f32 %v847_v52, 0.0  ;;  %v849_v55 = vadd.f32 %v848_v53, %v798_v49  ;;  %887 = vxpose.xlu0.b32.start [1/2] (short) %v852_v51, 128 }
 0x691   :  { %v854_v56 = vmax.f32 %v849_v55, 0.0  ;;  %856 = vxpose.xlu1.b32.end [2/2] (short) %v853_v54, 128 }
 0x693   :  { %888 = vxpose.xlu0.b32.end [2/2] (short) %v854_v56, 128 }
 0x709   :  { %v871_v57 = vpop.trf.xlu1 }
 0x70a   :  { %920 = vst.msk [vmem:[%s1496_s5] sm:$0xff] %vm919_vm1, %v871_v57 }
 0x70b   :  { %v903_v58 = vpop.trf.xlu0 }
 0x70c   :  { %936 = vst.msk [vmem:[%s1496_s5 + $0x80] sm:$0xff] %vm919_vm1, %v903_v58 }
 0x70d   :  { %v872_v59 = vpop.trf.xlu1 }
 0x70e   :  { %921 = vst.msk [vmem:[%s1496_s5 + $0x8] sm:$0xff] %vm919_vm1, %v872_v59 }
 0x70f   :  { %v904_v60 = vpop.trf.xlu0 }
 0x710   :  { %937 = vst.msk [vmem:[%s1496_s5 + $0x88] sm:$0xff] %vm919_vm1, %v904_v60 }
 0x711   :  { %v873_v61 = vpop.trf.xlu1 }
 0x712   :  { %922 = vst.msk [vmem:[%s1496_s5 + $0x10] sm:$0xff] %vm919_vm1, %v873_v61 }
 0x713   :  { %v905_v62 = vpop.trf.xlu0 }
 0x714   :  { %938 = vst.msk [vmem:[%s1496_s5 + $0x90] sm:$0xff] %vm919_vm1, %v905_v62 }
 0x715   :  { %v874_v63 = vpop.trf.xlu1 }
 0x716   :  { %923 = vst.msk [vmem:[%s1496_s5 + $0x18] sm:$0xff] %vm919_vm1, %v874_v63 }
 0x717   :  { %v906_v0 = vpop.trf.xlu0 }
 0x718   :  { %939 = vst.msk [vmem:[%s1496_s5 + $0x98] sm:$0xff] %vm919_vm1, %v906_v0 }
 0x719   :  { %v875_v1 = vpop.trf.xlu1 }
 0x71a   :  { %924 = vst.msk [vmem:[%s1496_s5 + $0x20] sm:$0xff] %vm919_vm1, %v875_v1 }
 0x71b   :  { %v907_v2 = vpop.trf.xlu0 }
 0x71c   :  { %940 = vst.msk [vmem:[%s1496_s5 + $0xa0] sm:$0xff] %vm919_vm1, %v907_v2 }
 0x71d   :  { %v876_v3 = vpop.trf.xlu1 }
 0x71e   :  { %925 = vst.msk [vmem:[%s1496_s5 + $0x28] sm:$0xff] %vm919_vm1, %v876_v3 }
 0x71f   :  { %v908_v4 = vpop.trf.xlu0 }
 0x720   :  { %941 = vst.msk [vmem:[%s1496_s5 + $0xa8] sm:$0xff] %vm919_vm1, %v908_v4 }
 0x721   :  { %v877_v6 = vpop.trf.xlu1 }
 0x722   :  { %926 = vst.msk [vmem:[%s1496_s5 + $0x30] sm:$0xff] %vm919_vm1, %v877_v6 }
 0x723   :  { %v909_v7 = vpop.trf.xlu0 }
 0x724   :  { %942 = vst.msk [vmem:[%s1496_s5 + $0xb0] sm:$0xff] %vm919_vm1, %v909_v7 }
 0x725   :  { %v878_v8 = vpop.trf.xlu1 }
 0x726   :  { %927 = vst.msk [vmem:[%s1496_s5 + $0x38] sm:$0xff] %vm919_vm1, %v878_v8 }
 0x727   :  { %v910_v9 = vpop.trf.xlu0 }
 0x728   :  { %943 = vst.msk [vmem:[%s1496_s5 + $0xb8] sm:$0xff] %vm919_vm1, %v910_v9 }
 0x729   :  { %v879_v10 = vpop.trf.xlu1 }
 0x72a   :  { %928 = vst.msk [vmem:[%s1496_s5 + $0x40] sm:$0xff] %vm919_vm1, %v879_v10 }
 0x72b   :  { %v911_v11 = vpop.trf.xlu0 }
 0x72c   :  { %944 = vst.msk [vmem:[%s1496_s5 + $0xc0] sm:$0xff] %vm919_vm1, %v911_v11 }
 0x72d   :  { %v880_v12 = vpop.trf.xlu1 }
 0x72e   :  { %929 = vst.msk [vmem:[%s1496_s5 + $0x48] sm:$0xff] %vm919_vm1, %v880_v12 }
 0x72f   :  { %v912_v13 = vpop.trf.xlu0 }
 0x730   :  { %945 = vst.msk [vmem:[%s1496_s5 + $0xc8] sm:$0xff] %vm919_vm1, %v912_v13 }
 0x731   :  { %v881_v14 = vpop.trf.xlu1 }
 0x732   :  { %930 = vst.msk [vmem:[%s1496_s5 + $0x50] sm:$0xff] %vm919_vm1, %v881_v14 }
 0x733   :  { %v913_v15 = vpop.trf.xlu0 }
 0x734   :  { %946 = vst.msk [vmem:[%s1496_s5 + $0xd0] sm:$0xff] %vm919_vm1, %v913_v15 }
 0x735   :  { %v882_v16 = vpop.trf.xlu1 }
 0x736   :  { %931 = vst.msk [vmem:[%s1496_s5 + $0x58] sm:$0xff] %vm919_vm1, %v882_v16 }
 0x737   :  { %v914_v17 = vpop.trf.xlu0 }
 0x738   :  { %947 = vst.msk [vmem:[%s1496_s5 + $0xd8] sm:$0xff] %vm919_vm1, %v914_v17 }
 0x739   :  { %v883_v18 = vpop.trf.xlu1 }
 0x73a   :  { %932 = vst.msk [vmem:[%s1496_s5 + $0x60] sm:$0xff] %vm919_vm1, %v883_v18 }
 0x73b   :  { %v915_v19 = vpop.trf.xlu0 }
 0x73c   :  { %948 = vst.msk [vmem:[%s1496_s5 + $0xe0] sm:$0xff] %vm919_vm1, %v915_v19 }
 0x73d   :  { %v884_v20 = vpop.trf.xlu1 }
 0x73e   :  { %933 = vst.msk [vmem:[%s1496_s5 + $0x68] sm:$0xff] %vm919_vm1, %v884_v20 }
 0x73f   :  { %v916_v21 = vpop.trf.xlu0 }
 0x740   :  { %949 = vst.msk [vmem:[%s1496_s5 + $0xe8] sm:$0xff] %vm919_vm1, %v916_v21 }
 0x741   :  { %v885_v22 = vpop.trf.xlu1 }
 0x742   :  { %934 = vst.msk [vmem:[%s1496_s5 + $0x70] sm:$0xff] %vm919_vm1, %v885_v22 }
 0x743   :  { %v917_v23 = vpop.trf.xlu0 }
 0x744   :  { %950 = vst.msk [vmem:[%s1496_s5 + $0xf0] sm:$0xff] %vm919_vm1, %v917_v23 }
 0x745   :  { %v886_v5 = vpop.trf.xlu1 }
 0x746   :  { %935 = vst.msk [vmem:[%s1496_s5 + $0x78] sm:$0xff] %vm919_vm1, %v886_v5 }
 0x747   :  { %v918_v24 = vpop.trf.xlu0 }
 0x748   :  { %951 = vst.msk [vmem:[%s1496_s5 + $0xf8] sm:$0xff] %vm919_vm1, %v918_v24 }

</bundles_post_ra>
